<compile_context>
chip_gen: v7x
topology: tpu7x:2x2x1
jax: 0.10.0
libtpu: 0.0.40
codegen_flags: <defaults>
</compile_context>

<pallas_src>
import functools
import math

import jax
import jax.numpy as jnp
from jax.experimental import pallas as pl
from jax.experimental.pallas import tpu as pltpu


def _cdiv(a, b):
    return -(-a // b)


def _fold_rows(x):
    """Fold (tile_rows, C) -> (min(8, tile_rows), C) with aligned static
    row-slice adds.  Slices start at sublane multiples of 8, so this is pure
    VPU work (no cross-lane XLU traffic, no relayout)."""
    rows = x.shape[0]
    if rows <= 8:
        return x
    part = x[0:8, :]
    for r in range(8, rows, 8):
        part = part + x[r:r + 8, :]
    return part


def _focal_kernel(inp_ref, tgt_ref, out_ref, acc_ref, *,
                  n_rows, tile_rows, n_cols, steps_per_split, inv_divisor,
                  gamma, hard_targets, need_mask):
    split = pl.program_id(0)
    step = pl.program_id(1)

    @pl.when(step == 0)
    def _():
        acc_ref[...] = jnp.zeros_like(acc_ref)

    def accumulate(apply_mask):
        x = inp_ref[...].astype(jnp.float32)
        t = tgt_ref[...].astype(jnp.float32)

        # Numerically stable BCE-with-logits: 1 exp + 1 log per element.
        e_x = jnp.exp(-jnp.abs(x))
        one_plus = 1.0 + e_x
        bce = jnp.maximum(x, 0.0) - x * t + jnp.log(one_plus)

        if hard_targets:
            # p = sigmoid(x) from the exp we already have; for t in {0,1}:
            # sigmoid(-x*(2t-1)) == p + t*(1 - 2p).  No extra transcendental.
            p = jnp.where(x >= 0.0, 1.0, e_x) / one_plus
            sig = p + t * (1.0 - 2.0 * p)
        else:
            # Exact soft-target path (one extra exp).
            z = -x * (t * 2.0 - 1.0)
            e_z = jnp.exp(-jnp.abs(z))
            sig = jnp.where(z >= 0.0, 1.0, e_z) / (1.0 + e_z)

        # Focal modulation: exp(gamma * logsigmoid(z)) == sig ** gamma.
        if gamma == 2.0:
            loss = (sig * sig) * bce
        elif gamma == 1.0:
            loss = sig * bce
        elif gamma == 0.0:
            loss = bce
        else:
            loss = jnp.exp(gamma * jnp.log(sig)) * bce

        if apply_mask:
            start_row = (split * steps_per_split + step) * tile_rows
            row = jax.lax.broadcasted_iota(jnp.int32, (tile_rows, n_cols), 0)
            loss = jnp.where(start_row + row < n_rows, loss, 0.0)

        # VPU-only per-step accumulation into a vreg-sized partial.
        acc_ref[...] += _fold_rows(loss)

    if need_mask:
        # Only the tile that straddles row n_rows (or a duplicated "ghost"
        # tile past it) pays for the iota + compare + select.
        is_boundary = ((split * steps_per_split + step) + 1) * tile_rows > n_rows

        @pl.when(jnp.logical_not(is_boundary))
        def _():
            accumulate(False)

        @pl.when(is_boundary)
        def _():
            accumulate(True)
    else:
        accumulate(False)

    @pl.when(step == pl.num_programs(1) - 1)
    def _():
        total = jnp.sum(acc_ref[...]) * inv_divisor   # one small XLU reduce
        out_ref[...] = jnp.full(out_ref.shape, total, dtype=out_ref.dtype)


def _device_config():
    """Generation-aware knobs: (num_splits, tile_bytes_per_input, vmem_limit)."""
    kind = ""
    try:
        kind = jax.devices()[0].device_kind.lower()
    except Exception:
        pass
    if "v7" in kind:
        # 2 TensorCores / chip, 3.2 TB/s HBM: split across cores, bigger tiles.
        # TODO(synk): validate on a v7x trace that the split axis shards across
        # both TensorCores; if one TC idles, switch to pltpu.CORE_PARALLEL.
        return 2, 4 * 1024 * 1024, 48 * 1024 * 1024
    # v5e / v6e: single TensorCore; ~2 MiB/input tile sits on the measured
    # HBM-roofline plateau; no split => no block round-up waste.
    return 1, 2 * 1024 * 1024, 32 * 1024 * 1024


def focal_loss_lafoss(inp, tgt, gamma=2.0, hard_targets=True):
    """Forward of FocalLoss_lafoss: loss.sum(dim=1).mean().

    hard_targets=True assumes {0,1} targets (the usual multi-label case) and
    saves one transcendental per element; pass hard_targets=False for soft /
    probabilistic targets to get the exact reference math.
    """
    if inp.shape != tgt.shape:
        raise ValueError("Target size ({}) must be the same as input size ({})"
                         .format(tgt.shape, inp.shape))
    if inp.ndim < 2:
        raise ValueError("FocalLoss_lafoss expects inputs with ndim >= 2")

    total = math.prod(inp.shape)
    # loss.sum(dim=1).mean() == loss.sum() / (numel / shape[1])
    divisor = total // inp.shape[1]

    # Lane-dense 2-D view (loss is elementwise + global sum, so any contiguous
    # reshape is equivalent).  Prefer (total/128, 128) for full lane use.
    if total % 128 == 0:
        n_rows, n_cols = total // 128, 128
    else:
        n_cols = inp.shape[-1]
        n_rows = total // n_cols
    inp2 = inp.reshape(n_rows, n_cols)
    tgt2 = tgt.reshape(n_rows, n_cols)

    num_splits, tile_bytes, vmem_limit = _device_config()

    # Row-tile sizing: ~tile_bytes of f32 per input tile, multiple of 8
    # sublanes, never taller than the array (the trailing partial block is
    # masked in-kernel instead of padding the inputs).
    if n_rows <= 8:
        tile_rows = n_rows
    else:
        target = max(8, (tile_bytes // (4 * n_cols)) // 8 * 8)
        tile_rows = max(8, min(target, (n_rows // 8) * 8))

    blocks = _cdiv(n_rows, tile_rows)
    if blocks < 2:
        num_splits = 1
    steps_per_split = _cdiv(blocks, num_splits)
    need_mask = num_splits * steps_per_split * tile_rows != n_rows

    if num_splits * steps_per_split > blocks:
        # Ghost steps (odd block count split across 2 cores): clamp the DMA
        # block index so it never reads fully out of bounds; the in-kernel
        # mask zeroes the duplicated tile's contribution.
        def in_map(p, i):
            return (jnp.minimum(p * steps_per_split + i, blocks - 1), 0)
    else:
        def in_map(p, i):
            return (p * steps_per_split + i, 0)

    acc_rows = min(8, tile_rows)
    kernel = functools.partial(
        _focal_kernel, n_rows=n_rows, tile_rows=tile_rows, n_cols=n_cols,
        steps_per_split=steps_per_split, inv_divisor=1.0 / float(divisor),
        gamma=float(gamma), hard_targets=bool(hard_targets),
        need_mask=need_mask)

    itemsize = inp.dtype.itemsize + tgt.dtype.itemsize
    cost = pl.CostEstimate(
        flops=18 * total,
        transcendentals=(2 if hard_targets else 3) * total,
        bytes_accessed=total * itemsize + num_splits * 8 * 128 * 4)

    partials = pl.pallas_call(
        kernel,
        out_shape=jax.ShapeDtypeStruct((num_splits, 8, 128), jnp.float32),
        grid=(num_splits, steps_per_split),
        in_specs=[
            pl.BlockSpec((tile_rows, n_cols), in_map),
            pl.BlockSpec((tile_rows, n_cols), in_map),
        ],
        out_specs=pl.BlockSpec((1, 8, 128), lambda p, i: (p, 0, 0)),
        scratch_shapes=[pltpu.VMEM((acc_rows, n_cols), jnp.float32)],
        compiler_params=pltpu.CompilerParams(
            dimension_semantics=("parallel", "arbitrary"),
            vmem_limit_bytes=vmem_limit),
        cost_estimate=cost,
    )(inp2, tgt2)

    # Tiny finalize: each split already scaled by 1/divisor; just add them up.
    return jnp.sum(partials[:, 0, 0])


def focal_loss_ref(inp, tgt, gamma=2.0):
    max_val = jnp.maximum(-inp, 0.0)
    loss = inp - inp * tgt + max_val + jnp.log(
        jnp.exp(-max_val) + jnp.exp(-inp - max_val))
    invprobs = jax.nn.log_sigmoid(-inp * (tgt * 2.0 - 1.0))
    loss = jnp.exp(invprobs * gamma) * loss
    return jnp.mean(jnp.sum(loss, axis=1))


if __name__ == "__main__":
    key = jax.random.PRNGKey(0)
    k1, k2, k3, k4, k5, k6 = jax.random.split(key, 6)

    # 1) batch=8, classes=128: lane-dense flat view, single block, no mask.
    x1 = jax.random.normal(k1, (8, 128), dtype=jnp.float32) * 2.0
    t1 = (jax.random.uniform(k2, (8, 128)) > 0.5).astype(jnp.float32)
    o1 = jax.block_until_ready(focal_loss_lafoss(x1, t1))
    r1 = focal_loss_ref(x1, t1)
    assert jnp.allclose(o1, r1, rtol=1e-5, atol=2e-5), (o1, r1)

    # 2) batch=13, classes=96: numel % 128 != 0 -> (13, 96) layout + row mask.
    x2 = jax.random.normal(k3, (13, 96), dtype=jnp.float32) * 2.0
    t2 = (jax.random.uniform(k4, (13, 96)) > 0.5).astype(jnp.float32)
    o2 = jax.block_until_ready(focal_loss_lafoss(x2, t2))
    r2 = focal_loss_ref(x2, t2)
    assert jnp.allclose(o2, r2, rtol=1e-5, atol=2e-5), (o2, r2)

    # 3) batch=50, classes=64: flat (25, 128) view, multiple row tiles + mask.
    x3 = jax.random.normal(k5, (50, 64), dtype=jnp.float32) * 2.0
    t3 = (jax.random.uniform(k6, (50, 64)) > 0.5).astype(jnp.float32)
    o3 = jax.block_until_ready(focal_loss_lafoss(x3, t3))
    r3 = focal_loss_ref(x3, t3)
    assert jnp.allclose(o3, r3, rtol=1e-5, atol=2e-5), (o3, r3)

    # 4) soft targets: exact fallback path (3 transcendentals) + row fold.
    k7, k8 = jax.random.split(k5)
    x4 = jax.random.normal(k7, (16, 128), dtype=jnp.float32) * 2.0
    t4 = jax.random.uniform(k8, (16, 128), dtype=jnp.float32)
    o4 = jax.block_until_ready(focal_loss_lafoss(x4, t4, hard_targets=False))
    r4 = focal_loss_ref(x4, t4)
    assert jnp.allclose(o4, r4, rtol=1e-5, atol=2e-5), (o4, r4)

    # 5) non-default gamma exercises the generalized sig**gamma path.
    o5 = jax.block_until_ready(focal_loss_lafoss(x1, t1, gamma=3.0))
    r5 = focal_loss_ref(x1, t1, gamma=3.0)
    assert jnp.allclose(o5, r5, rtol=1e-4, atol=2e-5), (o5, r5)

    print("KERNEL_OK")
</pallas_src>

<mosaic_0001>
module attributes {stable_mosaic.version = 11 : i64} {
  func.func @_focal_kernel(%arg0: i32, %arg1: i32, %arg2: memref<8x128xf32, #tpu.memory_space<vmem>>, %arg3: memref<8x128xf32, #tpu.memory_space<vmem>>, %arg4: memref<1x8x128xf32, #tpu.memory_space<vmem>>, %arg5: memref<8x128xf32, #tpu.memory_space<vmem>>) attributes {dimension_semantics = [#tpu.dimension_semantics<parallel>, #tpu.dimension_semantics<arbitrary>], iteration_bounds = array<i64: 1, 1>, scalar_prefetch = 0 : i64, scratch_operands = 1 : i64, tpu.core_type = #tpu.core_type<tc>, window_params = [{transform_indices = @transform_0, window_bounds = array<i64: 8, 128>}, {transform_indices = @transform_1, window_bounds = array<i64: 8, 128>}, {transform_indices = @transform_2, window_bounds = array<i64: 1, 8, 128>}]} {
    %c0_i32 = arith.constant 0 : i32
    %0 = arith.cmpi eq, %arg1, %c0_i32 : i32
    %1 = arith.extui %0 : i1 to i32
    %c0_i32_0 = arith.constant 0 : i32
    %2 = arith.cmpi ne, %1, %c0_i32_0 : i32
    scf.if %2 {
      %cst_16 = arith.constant 0.000000e+00 : f32
      %36 = vector.broadcast %cst_16 : f32 to vector<8x128xf32>
      %c0_17 = arith.constant 0 : index
      %c0_18 = arith.constant 0 : index
      %37 = vector.load %arg5[%c0_17, %c0_18] : memref<8x128xf32, #tpu.memory_space<vmem>>, vector<8x128xf32>
      tpu.vector_store %arg5[%c0_17, %c0_18], %36 {strides = array<i32>} : memref<8x128xf32, #tpu.memory_space<vmem>>, vector<8x128xf32>,
    } else {
    }
    %c0 = arith.constant 0 : index
    %c0_1 = arith.constant 0 : index
    %3 = vector.load %arg2[%c0, %c0_1] : memref<8x128xf32, #tpu.memory_space<vmem>>, vector<8x128xf32>
    %c0_2 = arith.constant 0 : index
    %c0_3 = arith.constant 0 : index
    %4 = vector.load %arg3[%c0_2, %c0_3] : memref<8x128xf32, #tpu.memory_space<vmem>>, vector<8x128xf32>
    %5 = math.absf %3 : vector<8x128xf32>
    %cst = arith.constant 0.000000e+00 : f32
    %6 = vector.broadcast %cst : f32 to vector<8x128xf32>
    %7 = arith.subf %6, %5 : vector<8x128xf32>
    %8 = math.exp %7 : vector<8x128xf32>
    %cst_4 = arith.constant 1.000000e+00 : f32
    %9 = vector.broadcast %cst_4 : f32 to vector<8x128xf32>
    %10 = arith.addf %9, %8 : vector<8x128xf32>
    %cst_5 = arith.constant 0.000000e+00 : f32
    %11 = vector.broadcast %cst_5 : f32 to vector<8x128xf32>
    %12 = arith.maximumf %3, %11 : vector<8x128xf32>
    %13 = arith.mulf %3, %4 : vector<8x128xf32>
    %14 = arith.subf %12, %13 : vector<8x128xf32>
    %15 = math.log %10 : vector<8x128xf32>
    %16 = arith.addf %14, %15 : vector<8x128xf32>
    %cst_6 = arith.constant 0.000000e+00 : f32
    %17 = vector.broadcast %cst_6 : f32 to vector<8x128xf32>
    %18 = arith.cmpf oge, %3, %17 : vector<8x128xf32>
    %cst_7 = arith.constant 1.000000e+00 : f32
    %19 = vector.broadcast %cst_7 : f32 to vector<8x128xf32>
    %20 = arith.select %18, %19, %8 : vector<8x128xi1>, vector<8x128xf32>
    %21 = arith.divf %20, %10 : vector<8x128xf32>
    %cst_8 = arith.constant 2.000000e+00 : f32
    %22 = vector.broadcast %cst_8 : f32 to vector<8x128xf32>
    %23 = arith.mulf %22, %21 : vector<8x128xf32>
    %cst_9 = arith.constant 1.000000e+00 : f32
    %24 = vector.broadcast %cst_9 : f32 to vector<8x128xf32>
    %25 = arith.subf %24, %23 : vector<8x128xf32>
    %26 = arith.mulf %4, %25 : vector<8x128xf32>
    %27 = arith.addf %21, %26 : vector<8x128xf32>
    %28 = arith.mulf %27, %27 : vector<8x128xf32>
    %29 = arith.mulf %28, %16 : vector<8x128xf32>
    %c0_10 = arith.constant 0 : index
    %c0_11 = arith.constant 0 : index
    %30 = vector.load %arg5[%c0_10, %c0_11] : memref<8x128xf32, #tpu.memory_space<vmem>>, vector<8x128xf32>
    %31 = arith.addf %30, %29 : vector<8x128xf32>
    %c0_12 = arith.constant 0 : index
    %c0_13 = arith.constant 0 : index
    %32 = vector.load %arg5[%c0_12, %c0_13] : memref<8x128xf32, #tpu.memory_space<vmem>>, vector<8x128xf32>
    tpu.vector_store %arg5[%c0_12, %c0_13], %31 {strides = array<i32>} : memref<8x128xf32, #tpu.memory_space<vmem>>, vector<8x128xf32>,
    %c0_i32_14 = arith.constant 0 : i32
    %33 = arith.cmpi eq, %arg1, %c0_i32_14 : i32
    %34 = arith.extui %33 : i1 to i32
    %c0_i32_15 = arith.constant 0 : i32
    %35 = arith.cmpi ne, %34, %c0_i32_15 : i32
    scf.if %35 {
      %c0_16 = arith.constant 0 : index
      %c0_17 = arith.constant 0 : index
      %36 = vector.load %arg5[%c0_16, %c0_17] : memref<8x128xf32, #tpu.memory_space<vmem>>, vector<8x128xf32>
      %37 = vector.shape_cast %36 : vector<8x128xf32> to vector<1x8x128xf32>
      %cst_18 = arith.constant dense<0.000000e+00> : vector<1xf32>
      %38 = vector.multi_reduction <add>, %37, %cst_18 [1, 2] : vector<1x8x128xf32> to vector<1xf32>
      %39 = vector.shape_cast %38 : vector<1xf32> to vector<1x1x1xf32>
      %40 = vector.extract %39[0, 0, 0] : f32 from vector<1x1x1xf32>
      %cst_19 = arith.constant 1.250000e-01 : f32
      %41 = arith.mulf %40, %cst_19 : f32
      %42 = vector.broadcast %41 : f32 to vector<1x8x128xf32>
      %c0_20 = arith.constant 0 : index
      %c0_21 = arith.constant 0 : index
      %c0_22 = arith.constant 0 : index
      %43 = vector.load %arg4[%c0_20, %c0_21, %c0_22] : memref<1x8x128xf32, #tpu.memory_space<vmem>>, vector<1x8x128xf32>
      tpu.vector_store %arg4[%c0_20, %c0_21, %c0_22], %42 {strides = array<i32>} : memref<1x8x128xf32, #tpu.memory_space<vmem>>, vector<1x8x128xf32>,
    } else {
    }
    return
  }
  func.func @transform_0(%arg0: i32, %arg1: i32) -> (i32, i32) {
    %c1_i32 = arith.constant 1 : i32
    %0 = arith.muli %arg0, %c1_i32 : i32
    %1 = arith.addi %0, %arg1 : i32
    %c0_i32 = arith.constant 0 : i32
    %c0_i32_0 = arith.constant 0 : i32
    return %1, %c0_i32 : i32, i32
  }
  func.func @transform_1(%arg0: i32, %arg1: i32) -> (i32, i32) {
    %c1_i32 = arith.constant 1 : i32
    %0 = arith.muli %arg0, %c1_i32 : i32
    %1 = arith.addi %0, %arg1 : i32
    %c0_i32 = arith.constant 0 : i32
    %c0_i32_0 = arith.constant 0 : i32
    return %1, %c0_i32 : i32, i32
  }
  func.func @transform_2(%arg0: i32, %arg1: i32) -> (i32, i32, i32) {
    %c0_i32 = arith.constant 0 : i32
    %c0_i32_0 = arith.constant 0 : i32
    %c0_i32_1 = arith.constant 0 : i32
    return %arg0, %c0_i32, %c0_i32_0 : i32, i32, i32
  }
}

</mosaic_0001>

<bundles_post_ra>
// kernel: tpu_custom_call.1
= control target key start
LH: loop header
LB: loop body
LE: loop exit
PB: predicated region body
PF: predicated region fallthrough
CT: control target
= control target key end

     0   :  { %7 = vsyncpa [#allocation4], 0  ;;  %s244_s0 = inlined_call_operand.hbm [shape: f32[8,128], index: 0, kind: input, shape index: {}]   ;;  %s245_s1 = inlined_call_operand.hbm [shape: f32[8,128], index: 1, kind: input, shape index: {}]   ;;  %s246_s2 = inlined_call_operand.hbm [shape: f32[1,8,128], index: 2, kind: output, shape index: {}]  }
   0x1   :  { %8 = vsyncpa [#allocation7], 0 }
   0x2   :  { %9 = vsyncpa [#allocation5], 0  ;;  %s190_s9 = smov [#allocation3]   ;;  %s191_s11 = smov [#allocation6]  }
   0x3   :  { %s19_s10 = sshll.u32 %s190_s9, 4  ;;  %s32_s12 = sshll.u32 %s191_s11, 4  ;;  %s20_s10 = int_to_ptr.vmem [resolvable:$true] %s19_s10  ;;  %s33_s12 = int_to_ptr.vmem [resolvable:$true] %s32_s12 }
   0x4   :  { %s118_s15 = scalar_lea.hbm %s244_s0, 128 }
   0x5   :  { %p119_p0 = scmp.ne.s32.totalorder %s244_s0, %s118_s15  ;;  %p122_p1 = scmp.lt.u32.totalorder %s118_s15, %s244_s0 }
   0x7   :  { %p124_p2 = pnand %p122_p1, %p119_p0 }
   0x9   :  { %127 = shalt.err (!%p124_p2)
}
   0xa   :  { %s128_s20 = scalar_lea.vmem %s20_s10, 128  ;;  %p133_p4 = scmp.lt.s32.totalorder %s20_s10, %s20_s10 }
   0xb   :  { %p129_p3 = scmp.ne.s32.totalorder %s20_s10, %s128_s20  ;;  %p134_p5 = scmp.lt.s32.totalorder %s128_s20, %s128_s20 }
   0xd   :  { %p135_p6 = por %p134_p5, %p133_p4 }
   0xf   :  { %p136_p7 = pnand %p135_p6, %p129_p3 }
  0x11   :  { %139 = shalt.err (!%p136_p7)
}
  0x12   :  { %22 = dma.hbm_to_vmem [thread:$0]  %s244_s0, 128, %s20_s10, [#allocation4]  }
  0x13   :  { %s140_s25 = scalar_lea.hbm %s245_s1, 128 }
  0x14   :  { %p141_p8 = scmp.ne.s32.totalorder %s245_s1, %s140_s25  ;;  %p144_p9 = scmp.lt.u32.totalorder %s140_s25, %s245_s1 }
  0x16   :  { %p146_p10 = pnand %p144_p9, %p141_p8 }
  0x18   :  { %149 = shalt.err (!%p146_p10)
}
  0x19   :  { %s150_s30 = scalar_lea.vmem %s33_s12, 128  ;;  %p155_p12 = scmp.lt.s32.totalorder %s33_s12, %s33_s12 }
  0x1a   :  { %p151_p11 = scmp.ne.s32.totalorder %s33_s12, %s150_s30  ;;  %p156_p13 = scmp.lt.s32.totalorder %s150_s30, %s150_s30 }
  0x1c   :  { %p157_p0 = por %p156_p13, %p155_p12 }
  0x1e   :  { %p158_p1 = pnand %p157_p0, %p151_p11 }
  0x20   :  { %161 = shalt.err (!%p158_p1)
}
  0x21   :  { %35 = dma.hbm_to_vmem [thread:$0]  %s245_s1, 128, %s33_s12, [#allocation7]  }
  0x22   :  { %184 = dma.done.wait [#allocation4], 128  }
  0x23   :  { %185 = vsyncadd [#allocation4], 4294967168 }
  0x24   :  { %186 = dma.done.wait [#allocation7], 128  }
  0x25   :  { %187 = vsyncadd [#allocation7], 4294967168  ;;  %v49_v0 = vld [vmem:[#allocation3] sm:$0xff]  ;;  %v50_v6 = vld [vmem:[#allocation6] sm:$0xff]  ;;  %s192_s1 = smov [#allocation8]  }
  0x26   :  { %v51_v1 = vand.u32 2147483647, %v49_v0  ;;  %vm62_vm0 = vcmp.ge.f32.partialorder %v49_v0, 0.0  ;;  %v56_v9 = vmax.f32 %v49_v0, 0.0  ;;  %v57_v10 = vmul.f32 %v50_v6, %v49_v0  ;;  %s97_s4 = sshll.u32 %s192_s1, 4  ;;  %s98_s4 = int_to_ptr.vmem [resolvable:$true] %s97_s4 }
  0x27   :  { %s162_s7 = scalar_lea.vmem %s98_s4, 128  ;;  %p167_p3 = scmp.lt.s32.totalorder %s98_s4, %s98_s4 }
  0x28   :  { %v52_v2 = vsub.f32 0.0, %v51_v1  ;;  %v58_v14 = vsub.f32 %v56_v9, %v57_v10  ;;  %p163_p2 = scmp.ne.s32.totalorder %s98_s4, %s162_s7  ;;  %p168_p4 = scmp.lt.s32.totalorder %s162_s7, %s162_s7 }
  0x2a   :  { %v53_v3 = vmul.f32 1.442695, %v52_v2  ;;  %p169_p5 = por %p168_p4, %p167_p3 }
  0x2c   :  { %112 = vpow2.f32 %v53_v3  ;;  %p170_p6 = pnand %p169_p5, %p163_p2 }
  0x36   :  { %v113_v4 = vpop.eup %112 }
  0x37   :  { %v55_v5 = vadd.f32 1.0, %v113_v4  ;;  %v63_v7 = vsel %vm62_vm0, 1.0, %v113_v4 }
  0x39   :  { %114 = vrcp.f32 %v55_v5 }
  0x3a   :  { %116 = vlog2.f32 %v55_v5 }
  0x43   :  { %v115_v8 = vpop.eup %114 }
  0x44   :  { %v65_v11 = vmul.f32 %v115_v8, %v63_v7  ;;  %v117_v12 = vpop.eup %116 }
  0x45   :  { %v60_v15 = vmul.f32 0.6931472, %v117_v12 }
  0x46   :  { %v66_v13 = vmul.f32 2.0, %v65_v11 }
  0x47   :  { %v61_v18 = vadd.f32 %v60_v15, %v58_v14 }
  0x48   :  { %v67_v16 = vsub.f32 1.0, %v66_v13 }
  0x4a   :  { %v68_v17 = vmul.f32 %v67_v16, %v50_v6 }
  0x4c   :  { %v69_v19 = vadd.f32 %v68_v17, %v65_v11 }
  0x4e   :  { %v70_v20 = vmul.f32 %v69_v19, %v69_v19 }
  0x50   :  { %v71_v21 = vmul.f32 %v70_v20, %v61_v18 }
  0x52   :  { %79 = vadd.xlane.f32.xlu0 %v71_v21 }
  0xdf   :  { %v80_v22 = vpop.xlane.xlu0 %79 }
  0xe0   :  { %v81_v23 = vrot.slane %v80_v22, 4 }
  0xe2   :  { %v82_v24 = vadd.f32 %v81_v23, %v80_v22 }
  0xe4   :  { %v83_v25 = vrot.slane %v82_v24, 2 }
  0xe6   :  { %v84_v26 = vadd.f32 %v83_v25, %v82_v24 }
  0xe8   :  { %v85_v27 = vrot.slane %v84_v26, 1 }
  0xea   :  { %v86_v28 = vadd.f32 %v85_v27, %v84_v26 }
  0xec   :  { %107 = vpush %v86_v28 }
 0x11d   :  { %s108_s5 = spop %107 }
 0x11e   :  { %s88_s6 = smul.f32 0.125, %s108_s5 }
 0x120   :  { %v89_v29 = vstv %s88_s6 }
 0x121   :  { %90 = vst [vmem:[#allocation8] sm:$0xff] %v89_v29 }
 0x122   :  { %173 = shalt.err (!%p170_p6)
}
 0x123   :  { %s174_s10 = scalar_lea.hbm %s246_s2, 128 }
 0x124   :  { %p175_p7 = scmp.ne.s32.totalorder %s246_s2, %s174_s10  ;;  %p178_p8 = scmp.lt.u32.totalorder %s174_s10, %s246_s2 }
 0x126   :  { %p180_p9 = pnand %p178_p8, %p175_p7 }
 0x128   :  { %183 = shalt.err (!%p180_p9)
}
 0x129   :  { %100 = dma.vmem_to_hbm [thread:$0]  %s98_s4, 128, %s246_s2, [#allocation5]  }
 0x12a   :  { %188 = dma.done.wait [#allocation5], 128  }
 0x12b   :  { %189 = vsyncadd [#allocation5], 4294967168 }
 0x12c   :  { %104 = vsyncpa [#allocation4], 1 }
 0x12d   :  { %105 = vsyncpa [#allocation7], 1 }
 0x12e   :  { %106 = vsyncpa [#allocation5], 1 }

</bundles_post_ra>
